<compile_context>
chip_gen: v6e
topology: v6e:2x2x1
jax: 0.10.0
libtpu: 0.0.40
codegen_flags: <defaults>
</compile_context>

<pallas_src>
import jax
import jax.numpy as jnp
from jax.experimental import pallas as pl
from jax.experimental.pallas import tpu as pltpu

BN_EPS = 0.8
LEAKY_SLOPE = 0.2
LANES = 128  # every feature dim is lane-padded to this


def _generator_kernel(x_ref, w_ref, vec_ref, out_ref):
    batch = x_ref.shape[0]
    inv_b = 1.0 / batch  # static python float

    def leaky(h):
        return jnp.where(h > 0, h, LEAKY_SLOPE * h)

    def mm(h, layer):
        # bf16 inputs on the MXU, f32 accumulation.
        return jnp.dot(h.astype(jnp.bfloat16), w_ref[layer],
                       preferred_element_type=jnp.float32)

    def bn_leaky(h, gamma, beta):
        # One-pass batch stats (biased variance); gamma fused into the scale.
        # eps=0.8 keeps the E[h^2]-E[h]^2 cancellation benign at these scales.
        s = jnp.sum(h, axis=0, keepdims=True)
        ss = jnp.sum(h * h, axis=0, keepdims=True)
        mean = s * inv_b
        var = ss * inv_b - mean * mean
        scale = gamma * jax.lax.rsqrt(var + BN_EPS)   # padded lanes: gamma=0 -> 0
        shift = beta - mean * scale
        return leaky(h * scale + shift)

    vec = vec_ref[...]                    # (8, 128) packed small vectors
    b1 = vec[0:1, :]
    g2, be2 = vec[1:2, :], vec[2:3, :]
    g3, be3 = vec[3:4, :], vec[4:5, :]
    g4, be4 = vec[5:6, :], vec[6:7, :]
    b5 = vec[7:8, :]

    # block 1: Linear -> LeakyReLU (no norm)
    h = leaky(mm(x_ref[...], 0) + b1)
    # blocks 2-4: Linear (bias dropped: cancels in BN mean-sub) -> BN -> LeakyReLU
    h = bn_leaky(mm(h, 1), g2, be2)
    h = bn_leaky(mm(h, 2), g3, be3)
    h = bn_leaky(mm(h, 3), g4, be4)
    # head: Linear -> Tanh
    out_ref[...] = jnp.tanh(mm(h, 4) + b5)


def _pad_to(a, shape):
    return jnp.pad(a, [(0, t - s) for s, t in zip(a.shape, shape)])


def make_generator(params):
    """Build a jitted forward.  All weight padding / packing / bf16 casting is
    done once here (hoisted out of the per-call path)."""
    bcg_dim = params["w1"].shape[0]
    ecg_dim = params["w5"].shape[1]
    assert bcg_dim <= LANES and ecg_dim <= LANES

    # One (5,128,128) bf16 weight stack (zero padding keeps padded lanes 0).
    w_stack = jnp.stack([
        _pad_to(params["w1"], (LANES, LANES)),
        _pad_to(params["w2"], (LANES, LANES)),
        _pad_to(params["w3"], (LANES, LANES)),
        _pad_to(params["w4"], (LANES, LANES)),
        _pad_to(params["w5"], (LANES, LANES)),
    ]).astype(jnp.bfloat16)

    # One (8,128) f32 tile: b1, (gamma,beta) x3, b5.  Padded gamma/beta = 0
    # keeps the padded lanes exactly zero end-to-end.
    vec = jnp.concatenate([
        _pad_to(params["b1"], (1, LANES)),
        _pad_to(params["g2"], (1, LANES)), _pad_to(params["be2"], (1, LANES)),
        _pad_to(params["g3"], (1, LANES)), _pad_to(params["be3"], (1, LANES)),
        _pad_to(params["g4"], (1, LANES)), _pad_to(params["be4"], (1, LANES)),
        _pad_to(params["b5"], (1, LANES)),
    ], axis=0)

    @jax.jit
    def forward(bcg):
        batch = bcg.shape[0]
        x_p = _pad_to(bcg, (batch, LANES))                 # only per-call pad

        # Rough single-buffer VMEM need (+ headroom); whole batch resident.
        act_bytes = batch * LANES * 4
        vmem_limit = max(w_stack.nbytes + vec.nbytes + 8 * act_bytes + (4 << 20),
                         16 * 1024 * 1024)

        out_padded = pl.pallas_call(
            _generator_kernel,
            # Ungridded, full-array single-buffer VMEM specs: no pipeline
            # machinery / double-buffering for a single-step problem.
            in_specs=[pl.BlockSpec(memory_space=pltpu.MemorySpace.VMEM)] * 3,
            out_specs=pl.BlockSpec(memory_space=pltpu.MemorySpace.VMEM),
            out_shape=jax.ShapeDtypeStruct((batch, LANES), jnp.float32),
            compiler_params=pltpu.CompilerParams(
                vmem_limit_bytes=int(vmem_limit)),
        )(x_p, w_stack, vec)

        return out_padded[:, :ecg_dim]

    return forward


def init_params(key, bcg_dim, ecg_dim):
    """Deterministic synthetic parameters matching the PyTorch module shapes.

    Linear weights stored as [in, out] (transposed vs. torch's [out, in]).
    BatchNorm gamma init = 1, beta init = 0 (as torch does)."""
    dims = [(bcg_dim, 128), (128, 64), (64, 32), (32, 64), (64, ecg_dim)]
    keys = jax.random.split(key, 2 * len(dims))
    params = {}
    for idx, (fan_in, fan_out) in enumerate(dims, start=1):
        bound = 1.0 / jnp.sqrt(jnp.float32(fan_in))
        w = jax.random.uniform(
            keys[2 * (idx - 1)], (fan_in, fan_out),
            minval=-bound, maxval=bound, dtype=jnp.float32)
        b = jax.random.uniform(
            keys[2 * (idx - 1) + 1], (1, fan_out),
            minval=-bound, maxval=bound, dtype=jnp.float32)
        params[f"w{idx}"] = w
        params[f"b{idx}"] = b
    for idx, feat in [(2, 64), (3, 32), (4, 64)]:
        params[f"g{idx}"] = jnp.ones((1, feat), jnp.float32)
        params[f"be{idx}"] = jnp.zeros((1, feat), jnp.float32)
    return params


def reference_forward(bcg, params):
    """Pure-JAX f32 reference (PyTorch-faithful math, incl. redundant biases)."""
    def leaky(h):
        return jnp.where(h > 0, h, LEAKY_SLOPE * h)

    def bn(h, g, b):
        mean = jnp.mean(h, axis=0, keepdims=True)
        var = jnp.mean((h - mean) ** 2, axis=0, keepdims=True)
        return (h - mean) / jnp.sqrt(var + BN_EPS) * g + b

    h = leaky(bcg @ params["w1"] + params["b1"])
    h = leaky(bn(h @ params["w2"] + params["b2"], params["g2"], params["be2"]))
    h = leaky(bn(h @ params["w3"] + params["b3"], params["g3"], params["be3"]))
    h = leaky(bn(h @ params["w4"] + params["b4"], params["g4"], params["be4"]))
    return jnp.tanh(h @ params["w5"] + params["b5"])


if __name__ == "__main__":
    key = jax.random.PRNGKey(0)
    k_param, k_x = jax.random.split(key)

    batch, bcg_dim, ecg_dim = 8, 32, 16
    params = init_params(k_param, bcg_dim, ecg_dim)
    bcg = jax.random.normal(k_x, (batch, bcg_dim), dtype=jnp.float32)

    forward = make_generator(params)     # padding/packing hoisted here (once)
    ecg = jax.block_until_ready(forward(bcg))

    ref = reference_forward(bcg, params)
    assert ecg.shape == (batch, ecg_dim)
    # bf16 matmul inputs (f32 accumulate) vs f32 reference -> relaxed tolerance.
    assert jnp.allclose(ecg, ref, atol=3e-2, rtol=3e-2), "mismatch vs reference"

    print("KERNEL_OK")
</pallas_src>

<mosaic_0001>
module attributes {stable_mosaic.version = 11 : i64} {
  func.func @_generator_kernel(%arg0: memref<8x128xf32, #tpu.memory_space<vmem>>, %arg1: memref<5x128x128xbf16, #tpu.memory_space<vmem>>, %arg2: memref<8x128xf32, #tpu.memory_space<vmem>>, %arg3: memref<8x128xf32, #tpu.memory_space<vmem>>) attributes {dimension_semantics = [], scalar_prefetch = 0 : i64, scratch_operands = 0 : i64, tpu.core_type = #tpu.core_type<tc>} {
    %c0 = arith.constant 0 : index
    %c0_0 = arith.constant 0 : index
    %0 = vector.load %arg2[%c0, %c0_0] : memref<8x128xf32, #tpu.memory_space<vmem>>, vector<8x128xf32>
    %1 = vector.extract_strided_slice %0 {offsets = [0, 0], sizes = [1, 128], strides = [1, 1]} : vector<8x128xf32> to vector<1x128xf32>
    %2 = vector.extract_strided_slice %0 {offsets = [1, 0], sizes = [1, 128], strides = [1, 1]} : vector<8x128xf32> to vector<1x128xf32>
    %3 = vector.extract_strided_slice %0 {offsets = [2, 0], sizes = [1, 128], strides = [1, 1]} : vector<8x128xf32> to vector<1x128xf32>
    %4 = vector.extract_strided_slice %0 {offsets = [3, 0], sizes = [1, 128], strides = [1, 1]} : vector<8x128xf32> to vector<1x128xf32>
    %5 = vector.extract_strided_slice %0 {offsets = [4, 0], sizes = [1, 128], strides = [1, 1]} : vector<8x128xf32> to vector<1x128xf32>
    %6 = vector.extract_strided_slice %0 {offsets = [5, 0], sizes = [1, 128], strides = [1, 1]} : vector<8x128xf32> to vector<1x128xf32>
    %7 = vector.extract_strided_slice %0 {offsets = [6, 0], sizes = [1, 128], strides = [1, 1]} : vector<8x128xf32> to vector<1x128xf32>
    %8 = vector.extract_strided_slice %0 {offsets = [7, 0], sizes = [1, 128], strides = [1, 1]} : vector<8x128xf32> to vector<1x128xf32>
    %c0_1 = arith.constant 0 : index
    %c0_2 = arith.constant 0 : index
    %9 = vector.load %arg0[%c0_1, %c0_2] : memref<8x128xf32, #tpu.memory_space<vmem>>, vector<8x128xf32>
    %10 = arith.truncf %9 : vector<8x128xf32> to vector<8x128xbf16>
    %c0_3 = arith.constant 0 : index
    %c0_4 = arith.constant 0 : index
    %c0_5 = arith.constant 0 : index
    %11 = vector.load %arg1[%c0_3, %c0_4, %c0_5] : memref<5x128x128xbf16, #tpu.memory_space<vmem>>, vector<1x128x128xbf16>
    %12 = vector.shape_cast %11 : vector<1x128x128xbf16> to vector<128x128xbf16>
    %cst = arith.constant dense<0.000000e+00> : vector<8x128xf32>
    %13 = tpu.matmul %10, %12, %cst {dimension_numbers = #tpu.dot_dimension_numbers<[1], [0], [0], [1], [0, 0, 1, 1], [], []>} : vector<8x128xbf16>, vector<128x128xbf16>, vector<8x128xf32> -> vector<8x128xf32>
    %14 = vector.broadcast %1 : vector<1x128xf32> to vector<8x128xf32>
    %15 = arith.addf %13, %14 : vector<8x128xf32>
    %cst_6 = arith.constant 0.000000e+00 : f32
    %16 = vector.broadcast %cst_6 : f32 to vector<8x128xf32>
    %17 = arith.cmpf ogt, %15, %16 : vector<8x128xf32>
    %cst_7 = arith.constant 2.000000e-01 : f32
    %18 = vector.broadcast %cst_7 : f32 to vector<8x128xf32>
    %19 = arith.mulf %18, %15 : vector<8x128xf32>
    %20 = arith.select %17, %15, %19 : vector<8x128xi1>, vector<8x128xf32>
    %21 = arith.truncf %20 : vector<8x128xf32> to vector<8x128xbf16>
    %c1 = arith.constant 1 : index
    %c0_8 = arith.constant 0 : index
    %c0_9 = arith.constant 0 : index
    %22 = vector.load %arg1[%c1, %c0_8, %c0_9] : memref<5x128x128xbf16, #tpu.memory_space<vmem>>, vector<1x128x128xbf16>
    %23 = vector.shape_cast %22 : vector<1x128x128xbf16> to vector<128x128xbf16>
    %cst_10 = arith.constant dense<0.000000e+00> : vector<8x128xf32>
    %24 = tpu.matmul %21, %23, %cst_10 {dimension_numbers = #tpu.dot_dimension_numbers<[1], [0], [0], [1], [0, 0, 1, 1], [], []>} : vector<8x128xbf16>, vector<128x128xbf16>, vector<8x128xf32> -> vector<8x128xf32>
    %cst_11 = arith.constant dense<0.000000e+00> : vector<128xf32>
    %25 = vector.multi_reduction <add>, %24, %cst_11 [0] : vector<8x128xf32> to vector<128xf32>
    %26 = vector.shape_cast %25 : vector<128xf32> to vector<1x128xf32>
    %27 = arith.mulf %24, %24 : vector<8x128xf32>
    %cst_12 = arith.constant dense<0.000000e+00> : vector<128xf32>
    %28 = vector.multi_reduction <add>, %27, %cst_12 [0] : vector<8x128xf32> to vector<128xf32>
    %29 = vector.shape_cast %28 : vector<128xf32> to vector<1x128xf32>
    %cst_13 = arith.constant 1.250000e-01 : f32
    %30 = vector.broadcast %cst_13 : f32 to vector<1x128xf32>
    %31 = arith.mulf %26, %30 : vector<1x128xf32>
    %cst_14 = arith.constant 1.250000e-01 : f32
    %32 = vector.broadcast %cst_14 : f32 to vector<1x128xf32>
    %33 = arith.mulf %29, %32 : vector<1x128xf32>
    %34 = arith.mulf %31, %31 : vector<1x128xf32>
    %35 = arith.subf %33, %34 : vector<1x128xf32>
    %cst_15 = arith.constant 8.000000e-01 : f32
    %36 = vector.broadcast %cst_15 : f32 to vector<1x128xf32>
    %37 = arith.addf %35, %36 : vector<1x128xf32>
    %38 = math.rsqrt %37 : vector<1x128xf32>
    %39 = arith.mulf %2, %38 : vector<1x128xf32>
    %40 = arith.mulf %31, %39 : vector<1x128xf32>
    %41 = arith.subf %3, %40 : vector<1x128xf32>
    %42 = vector.broadcast %39 : vector<1x128xf32> to vector<8x128xf32>
    %43 = arith.mulf %24, %42 : vector<8x128xf32>
    %44 = vector.broadcast %41 : vector<1x128xf32> to vector<8x128xf32>
    %45 = arith.addf %43, %44 : vector<8x128xf32>
    %cst_16 = arith.constant 0.000000e+00 : f32
    %46 = vector.broadcast %cst_16 : f32 to vector<8x128xf32>
    %47 = arith.cmpf ogt, %45, %46 : vector<8x128xf32>
    %cst_17 = arith.constant 2.000000e-01 : f32
    %48 = vector.broadcast %cst_17 : f32 to vector<8x128xf32>
    %49 = arith.mulf %48, %45 : vector<8x128xf32>
    %50 = arith.select %47, %45, %49 : vector<8x128xi1>, vector<8x128xf32>
    %51 = arith.truncf %50 : vector<8x128xf32> to vector<8x128xbf16>
    %c2 = arith.constant 2 : index
    %c0_18 = arith.constant 0 : index
    %c0_19 = arith.constant 0 : index
    %52 = vector.load %arg1[%c2, %c0_18, %c0_19] : memref<5x128x128xbf16, #tpu.memory_space<vmem>>, vector<1x128x128xbf16>
    %53 = vector.shape_cast %52 : vector<1x128x128xbf16> to vector<128x128xbf16>
    %cst_20 = arith.constant dense<0.000000e+00> : vector<8x128xf32>
    %54 = tpu.matmul %51, %53, %cst_20 {dimension_numbers = #tpu.dot_dimension_numbers<[1], [0], [0], [1], [0, 0, 1, 1], [], []>} : vector<8x128xbf16>, vector<128x128xbf16>, vector<8x128xf32> -> vector<8x128xf32>
    %cst_21 = arith.constant dense<0.000000e+00> : vector<128xf32>
    %55 = vector.multi_reduction <add>, %54, %cst_21 [0] : vector<8x128xf32> to vector<128xf32>
    %56 = vector.shape_cast %55 : vector<128xf32> to vector<1x128xf32>
    %57 = arith.mulf %54, %54 : vector<8x128xf32>
    %cst_22 = arith.constant dense<0.000000e+00> : vector<128xf32>
    %58 = vector.multi_reduction <add>, %57, %cst_22 [0] : vector<8x128xf32> to vector<128xf32>
    %59 = vector.shape_cast %58 : vector<128xf32> to vector<1x128xf32>
    %cst_23 = arith.constant 1.250000e-01 : f32
    %60 = vector.broadcast %cst_23 : f32 to vector<1x128xf32>
    %61 = arith.mulf %56, %60 : vector<1x128xf32>
    %cst_24 = arith.constant 1.250000e-01 : f32
    %62 = vector.broadcast %cst_24 : f32 to vector<1x128xf32>
    %63 = arith.mulf %59, %62 : vector<1x128xf32>
    %64 = arith.mulf %61, %61 : vector<1x128xf32>
    %65 = arith.subf %63, %64 : vector<1x128xf32>
    %cst_25 = arith.constant 8.000000e-01 : f32
    %66 = vector.broadcast %cst_25 : f32 to vector<1x128xf32>
    %67 = arith.addf %65, %66 : vector<1x128xf32>
    %68 = math.rsqrt %67 : vector<1x128xf32>
    %69 = arith.mulf %4, %68 : vector<1x128xf32>
    %70 = arith.mulf %61, %69 : vector<1x128xf32>
    %71 = arith.subf %5, %70 : vector<1x128xf32>
    %72 = vector.broadcast %69 : vector<1x128xf32> to vector<8x128xf32>
    %73 = arith.mulf %54, %72 : vector<8x128xf32>
    %74 = vector.broadcast %71 : vector<1x128xf32> to vector<8x128xf32>
    %75 = arith.addf %73, %74 : vector<8x128xf32>
    %cst_26 = arith.constant 0.000000e+00 : f32
    %76 = vector.broadcast %cst_26 : f32 to vector<8x128xf32>
    %77 = arith.cmpf ogt, %75, %76 : vector<8x128xf32>
    %cst_27 = arith.constant 2.000000e-01 : f32
    %78 = vector.broadcast %cst_27 : f32 to vector<8x128xf32>
    %79 = arith.mulf %78, %75 : vector<8x128xf32>
    %80 = arith.select %77, %75, %79 : vector<8x128xi1>, vector<8x128xf32>
    %81 = arith.truncf %80 : vector<8x128xf32> to vector<8x128xbf16>
    %c3 = arith.constant 3 : index
    %c0_28 = arith.constant 0 : index
    %c0_29 = arith.constant 0 : index
    %82 = vector.load %arg1[%c3, %c0_28, %c0_29] : memref<5x128x128xbf16, #tpu.memory_space<vmem>>, vector<1x128x128xbf16>
    %83 = vector.shape_cast %82 : vector<1x128x128xbf16> to vector<128x128xbf16>
    %cst_30 = arith.constant dense<0.000000e+00> : vector<8x128xf32>
    %84 = tpu.matmul %81, %83, %cst_30 {dimension_numbers = #tpu.dot_dimension_numbers<[1], [0], [0], [1], [0, 0, 1, 1], [], []>} : vector<8x128xbf16>, vector<128x128xbf16>, vector<8x128xf32> -> vector<8x128xf32>
    %cst_31 = arith.constant dense<0.000000e+00> : vector<128xf32>
    %85 = vector.multi_reduction <add>, %84, %cst_31 [0] : vector<8x128xf32> to vector<128xf32>
    %86 = vector.shape_cast %85 : vector<128xf32> to vector<1x128xf32>
    %87 = arith.mulf %84, %84 : vector<8x128xf32>
    %cst_32 = arith.constant dense<0.000000e+00> : vector<128xf32>
    %88 = vector.multi_reduction <add>, %87, %cst_32 [0] : vector<8x128xf32> to vector<128xf32>
    %89 = vector.shape_cast %88 : vector<128xf32> to vector<1x128xf32>
    %cst_33 = arith.constant 1.250000e-01 : f32
    %90 = vector.broadcast %cst_33 : f32 to vector<1x128xf32>
    %91 = arith.mulf %86, %90 : vector<1x128xf32>
    %cst_34 = arith.constant 1.250000e-01 : f32
    %92 = vector.broadcast %cst_34 : f32 to vector<1x128xf32>
    %93 = arith.mulf %89, %92 : vector<1x128xf32>
    %94 = arith.mulf %91, %91 : vector<1x128xf32>
    %95 = arith.subf %93, %94 : vector<1x128xf32>
    %cst_35 = arith.constant 8.000000e-01 : f32
    %96 = vector.broadcast %cst_35 : f32 to vector<1x128xf32>
    %97 = arith.addf %95, %96 : vector<1x128xf32>
    %98 = math.rsqrt %97 : vector<1x128xf32>
    %99 = arith.mulf %6, %98 : vector<1x128xf32>
    %100 = arith.mulf %91, %99 : vector<1x128xf32>
    %101 = arith.subf %7, %100 : vector<1x128xf32>
    %102 = vector.broadcast %99 : vector<1x128xf32> to vector<8x128xf32>
    %103 = arith.mulf %84, %102 : vector<8x128xf32>
    %104 = vector.broadcast %101 : vector<1x128xf32> to vector<8x128xf32>
    %105 = arith.addf %103, %104 : vector<8x128xf32>
    %cst_36 = arith.constant 0.000000e+00 : f32
    %106 = vector.broadcast %cst_36 : f32 to vector<8x128xf32>
    %107 = arith.cmpf ogt, %105, %106 : vector<8x128xf32>
    %cst_37 = arith.constant 2.000000e-01 : f32
    %108 = vector.broadcast %cst_37 : f32 to vector<8x128xf32>
    %109 = arith.mulf %108, %105 : vector<8x128xf32>
    %110 = arith.select %107, %105, %109 : vector<8x128xi1>, vector<8x128xf32>
    %111 = arith.truncf %110 : vector<8x128xf32> to vector<8x128xbf16>
    %c4 = arith.constant 4 : index
    %c0_38 = arith.constant 0 : index
    %c0_39 = arith.constant 0 : index
    %112 = vector.load %arg1[%c4, %c0_38, %c0_39] : memref<5x128x128xbf16, #tpu.memory_space<vmem>>, vector<1x128x128xbf16>
    %113 = vector.shape_cast %112 : vector<1x128x128xbf16> to vector<128x128xbf16>
    %cst_40 = arith.constant dense<0.000000e+00> : vector<8x128xf32>
    %114 = tpu.matmul %111, %113, %cst_40 {dimension_numbers = #tpu.dot_dimension_numbers<[1], [0], [0], [1], [0, 0, 1, 1], [], []>} : vector<8x128xbf16>, vector<128x128xbf16>, vector<8x128xf32> -> vector<8x128xf32>
    %115 = vector.broadcast %8 : vector<1x128xf32> to vector<8x128xf32>
    %116 = arith.addf %114, %115 : vector<8x128xf32>
    %117 = math.tanh %116 : vector<8x128xf32>
    %c0_41 = arith.constant 0 : index
    %c0_42 = arith.constant 0 : index
    %118 = vector.load %arg3[%c0_41, %c0_42] : memref<8x128xf32, #tpu.memory_space<vmem>>, vector<8x128xf32>
    tpu.vector_store %arg3[%c0_41, %c0_42], %117 {strides = array<i32>} : memref<8x128xf32, #tpu.memory_space<vmem>>, vector<8x128xf32>,
    return
  }
}

</mosaic_0001>

<bundles_post_ra>
// kernel: forward.1
= control target key start
LH: loop header
LB: loop body
LE: loop exit
PB: predicated region body
PF: predicated region fallthrough
CT: control target
= control target key end

     0   :  { %8 = vsyncpa [#allocation3], 0  ;;  %s1094_s0 = inlined_call_operand.vmem [shape: f32[8,128], index: 0, kind: input, shape index: {}]   ;;  %s1095_s1 = inlined_call_operand.hbm [shape: bf16[5,128,128], index: 1, kind: input, shape index: {}]   ;;  %s1096_s2 = inlined_call_operand.vmem [shape: f32[8,128], index: 2, kind: input, shape index: {}]   ;;  %s1097_s3 = inlined_call_operand.hbm [shape: f32[8,128], index: 3, kind: output, shape index: {}]  }
   0x1   :  { %9 = vsyncpa [#allocation4], 0  ;;  %s986_s12 = smov [#allocation2]  }
   0x2   :  { %s17_s13 = sshll.u32 %s986_s12, 4  ;;  %s18_s13 = int_to_ptr.vmem [resolvable:$true] %s17_s13 }
   0x3   :  { %s950_s14 = scalar_lea.vmem %s18_s13, 5120  ;;  %p955_p1 = scmp.lt.s32.totalorder %s18_s13, %s18_s13 }
   0x4   :  { %p951_p0 = scmp.ne.s32.totalorder %s18_s13, %s950_s14  ;;  %p956_p2 = scmp.lt.s32.totalorder %s950_s14, %s950_s14 }
   0x6   :  { %p957_p3 = por %p956_p2, %p955_p1 }
   0x8   :  { %p958_p4 = pnand %p957_p3, %p951_p0 }
   0xa   :  { %961 = shalt.err (!%p958_p4)
}
   0xb   :  { %s987_s15 = smov 64   ;;  %s988_s16 = smov 4  }
   0xc   :  { %23 = dma.hbm_to_vmem [thread:$0]  %s1095_s1, 5120, %s18_s13, [#allocation3], %s987_s15, %s987_s15, %s988_s16  }
   0xd   :  { %982 = dma.done.wait [#allocation3], 5120  }
   0xe   :  { %983 = vsyncadd [#allocation3], 4294962176  ;;  %v989_v0 = vmov 0.0   ;;  %vm990_vm0 = vmmov 0   ;;  %v894_v1 = vld [vmem:[#allocation2 + $0x38] sm:$0xff]   ;;  %v895_v2 = vld [vmem:[#allocation2 + $0x30] sm:$0xff]   ;;  %v49_v19 = vlaneseq }
   0xf   :  { %788 = vmatprep.subr.bf16.mxu0 %v989_v0  ;;  %804 = vmatprep.mubr.msk.bf16.mxu0 %vm990_vm0, %v989_v0  ;;  %v896_v3 = vld [vmem:[#allocation2 + $0x28] sm:$0xff]   ;;  %v902_v4 = vld [vmem:[#allocation2 + $0x78] sm:$0xff]   ;;  %v897_v5 = vld [vmem:[#allocation2 + $0x20] sm:$0xff]  }
  0x10   :  { %808 = vmatprep.subr.bf16.mxu1 %v989_v0  ;;  %824 = vmatprep.mubr.msk.bf16.mxu1 %vm990_vm0, %v989_v0  ;;  %v903_v6 = vld [vmem:[#allocation2 + $0x70] sm:$0xff]   ;;  %v898_v7 = vld [vmem:[#allocation2 + $0x18] sm:$0xff]   ;;  %v904_v8 = vld [vmem:[#allocation2 + $0x68] sm:$0xff]   ;;  %v1042_v20 = vshrl.u32 %v49_v19, 7 }
  0x11   :  { %789 = vmatpush3.bf16.msra.mxu0 %v894_v1  ;;  %809 = vmatpush3.bf16.msra.mxu1 %v902_v4  ;;  %v899_v9 = vld [vmem:[#allocation2 + $0x10] sm:$0xff]   ;;  %v905_v10 = vld [vmem:[#allocation2 + $0x60] sm:$0xff]   ;;  %v900_v11 = vld [vmem:[#allocation2 + $0x8] sm:$0xff]  }
  0x12   :  { %790 = vmatprep.subr.bf16.mxu0 %v989_v0  ;;  %810 = vmatprep.subr.bf16.mxu1 %v989_v0  ;;  %v906_v12 = vld [vmem:[#allocation2 + $0x58] sm:$0xff]   ;;  %v901_v13 = vld [vmem:[#allocation2] sm:$0xff]   ;;  %v907_v15 = vld [vmem:[#allocation2 + $0x50] sm:$0xff]   ;;  %v51_v21 = vsub.s32 0, %v1042_v20  ;;  %v277_v1 = vsub.s32 1, %v1042_v20 }
  0x13   :  { %v31_v14 = vld [vmem:[%s1094_s0] sm:$0xff]  ;;  %v908_v17 = vld [vmem:[#allocation2 + $0x48] sm:$0xff]   ;;  %v910_v32 = vld [vmem:[#allocation2 + $0xb8] sm:$0xff]  }
  0x14   :  { %v32_v16 = vpack.c.bf16 %v31_v14, %v31_v14  ;;  %v909_v18 = vld [vmem:[#allocation2 + $0x40] sm:$0xff]   ;;  %v911_v33 = vld [vmem:[#allocation2 + $0xb0] sm:$0xff]   ;;  %v912_v34 = vld [vmem:[#allocation2 + $0xa8] sm:$0xff]  }
  0x15   :  { %791 = vmatpush3.bf16.msra.mxu0 %v895_v2  ;;  %811 = vmatpush3.bf16.msra.mxu1 %v903_v6  ;;  %v1048_v22 = vld [vmem:[%s1096_s2] sm:$0xff]  ;;  %v914_v36 = vld [vmem:[#allocation2 + $0x98] sm:$0xff]   ;;  %v915_v37 = vld [vmem:[#allocation2 + $0x90] sm:$0xff]   ;;  %s991_s2 = smov [#allocation5]  }
  0x16   :  { %792 = vmatprep.subr.bf16.mxu0 %v989_v0  ;;  %812 = vmatprep.subr.bf16.mxu1 %v989_v0  ;;  %v52_v23 = vrot.slane %v1048_v22, %v51_v21  ;;  %v913_v35 = vld [vmem:[#allocation2 + $0xa0] sm:$0xff]   ;;  %v916_v38 = vld [vmem:[#allocation2 + $0x88] sm:$0xff]   ;;  %v919_v14 = vld [vmem:[#allocation2 + $0xf0] sm:$0xff]   ;;  %s694_s21 = sshll.u32 %s991_s2, 4  ;;  %s695_s21 = int_to_ptr.vmem [resolvable:$true] %s694_s21 }
  0x17   :  { %v917_v39 = vld [vmem:[#allocation2 + $0x80] sm:$0xff]   ;;  %v924_v19 = vld [vmem:[#allocation2 + $0xc8] sm:$0xff]   ;;  %s962_s22 = scalar_lea.vmem %s695_s21, 128  ;;  %p967_p6 = scmp.lt.s32.totalorder %s695_s21, %s695_s21 }
  0x18   :  { %v925_v21 = vld [vmem:[#allocation2 + $0xc0] sm:$0xff]   ;;  %p963_p5 = scmp.ne.s32.totalorder %s695_s21, %s962_s22  ;;  %p968_p7 = scmp.lt.s32.totalorder %s962_s22, %s962_s22 }
  0x19   :  { %793 = vmatpush3.bf16.msra.mxu0 %v896_v3  ;;  %813 = vmatpush3.bf16.msra.mxu1 %v904_v8 }
  0x1a   :  { %794 = vmatprep.subr.bf16.mxu0 %v989_v0  ;;  %814 = vmatprep.subr.bf16.mxu1 %v989_v0  ;;  %p969_p8 = por %p968_p7, %p967_p6 }
  0x1c   :  { %p970_p9 = pnand %p969_p8, %p963_p5 }
  0x1d   :  { %795 = vmatpush3.bf16.msra.mxu0 %v897_v5  ;;  %815 = vmatpush3.bf16.msra.mxu1 %v905_v10  ;;  %v282_v5 = vsub.s32 2, %v1042_v20 }
  0x1e   :  { %796 = vmatprep.subr.bf16.mxu0 %v989_v0  ;;  %816 = vmatprep.subr.bf16.mxu1 %v989_v0 }
  0x21   :  { %797 = vmatpush3.bf16.msra.mxu0 %v898_v7  ;;  %817 = vmatpush3.bf16.msra.mxu1 %v906_v12 }
  0x22   :  { %798 = vmatprep.subr.bf16.mxu0 %v989_v0  ;;  %818 = vmatprep.subr.bf16.mxu1 %v989_v0 }
  0x25   :  { %799 = vmatpush3.bf16.msra.mxu0 %v899_v9  ;;  %819 = vmatpush3.bf16.msra.mxu1 %v907_v15  ;;  %v920_v15 = vld [vmem:[#allocation2 + $0xe8] sm:$0xff]  }
  0x26   :  { %800 = vmatprep.subr.bf16.mxu0 %v989_v0  ;;  %820 = vmatprep.subr.bf16.mxu1 %v989_v0 }
  0x29   :  { %801 = vmatpush3.bf16.msra.mxu0 %v900_v11  ;;  %821 = vmatpush3.bf16.msra.mxu1 %v908_v17  ;;  %v922_v17 = vld [vmem:[#allocation2 + $0xd8] sm:$0xff]  }
  0x2a   :  { %802 = vmatprep.subr.bf16.mxu0 %v989_v0  ;;  %822 = vmatprep.subr.bf16.mxu1 %v989_v0 }
  0x2d   :  { %803 = vmatpush3.bf16.msra.mxu0 %v901_v13  ;;  %823 = vmatpush3.bf16.msra.mxu1 %v909_v18  ;;  %v918_v13 = vld [vmem:[#allocation2 + $0xf8] sm:$0xff]   ;;  %v923_v18 = vld [vmem:[#allocation2 + $0xd0] sm:$0xff]  }
  0x2e   :  { %828 = vmatprep.subr.bf16.mxu0 %v989_v0  ;;  %848 = vmatprep.subr.bf16.mxu1 %v989_v0 }
  0x30   :  { %805 = vmatmul.mubr.bf16.vlgmr.msra.gmra.mxu0 %v32_v16  ;;  %v921_v16 = vld [vmem:[#allocation2 + $0xe0] sm:$0xff]  }
  0x31   :  { %844 = vmatprep.mubr.msk.bf16.mxu0 %vm990_vm0, %v989_v0  ;;  %829 = vmatpush3.bf16.msra.mxu0 %v910_v32 }
  0x32   :  { %830 = vmatprep.subr.bf16.mxu0 %v989_v0 }
  0x35   :  { %831 = vmatpush3.bf16.msra.mxu0 %v911_v33 }
  0x36   :  { %832 = vmatprep.subr.bf16.mxu0 %v989_v0 }
  0x39   :  { %833 = vmatpush3.bf16.msra.mxu0 %v912_v34 }
  0x3a   :  { %834 = vmatprep.subr.bf16.mxu0 %v989_v0 }
  0x3d   :  { %835 = vmatpush3.bf16.msra.mxu0 %v913_v35 }
  0x3e   :  { %836 = vmatprep.subr.bf16.mxu0 %v989_v0 }
  0x41   :  { %837 = vmatpush3.bf16.msra.mxu0 %v914_v36 }
  0x42   :  { %838 = vmatprep.subr.bf16.mxu0 %v989_v0 }
  0x45   :  { %839 = vmatpush3.bf16.msra.mxu0 %v915_v37 }
  0x46   :  { %840 = vmatprep.subr.bf16.mxu0 %v989_v0 }
  0x49   :  { %841 = vmatpush3.bf16.msra.mxu0 %v916_v38 }
  0x4a   :  { %842 = vmatprep.subr.bf16.mxu0 %v989_v0 }
  0x4d   :  { %843 = vmatpush3.bf16.msra.mxu0 %v917_v39 }
  0x4e   :  { %868 = vmatprep.subr.bf16.mxu0 %v989_v0 }
  0xf0   :  { %v135_v24 = vpop.f32.mrf.mxu0 }
  0xf1   :  { %v136_v25 = vadd.f32 %v135_v24, %v52_v23 }
  0xf2   :  { %v806_v26 = vpop.f32.mrf.mxu0 }
  0xf3   :  { %vm141_vm1 = vcmp.gt.f32.partialorder %v136_v25, 0.0  ;;  %v142_v27 = vmul.f32 0.2, %v136_v25 }
  0xf4   :  { %v138_v28 = vpop.f32.mrf.mxu0 }
  0xf5   :  { %v143_v29 = vsel %vm141_vm1, %v136_v25, %v142_v27 }
  0xf6   :  { %v807_v30 = vpop.f32.mrf.mxu0  ;;  %v144_v31 = vpack.c.bf16 %v143_v29, %v143_v29 }
  0xf8   :  { %825 = vmatmul.mubr.bf16.vlgmr.msra.gmra.mxu1 %v144_v31 }
  0xf9   :  { %864 = vmatprep.mubr.msk.bf16.mxu1 %vm990_vm0, %v989_v0  ;;  %849 = vmatpush3.bf16.msra.mxu1 %v918_v13 }
  0xfa   :  { %850 = vmatprep.subr.bf16.mxu1 %v989_v0 }
  0xfd   :  { %851 = vmatpush3.bf16.msra.mxu1 %v919_v14 }
  0xfe   :  { %852 = vmatprep.subr.bf16.mxu1 %v989_v0 }
 0x101   :  { %853 = vmatpush3.bf16.msra.mxu1 %v920_v15 }
 0x102   :  { %854 = vmatprep.subr.bf16.mxu1 %v989_v0 }
 0x105   :  { %855 = vmatpush3.bf16.msra.mxu1 %v921_v16 }
 0x106   :  { %856 = vmatprep.subr.bf16.mxu1 %v989_v0 }
 0x109   :  { %857 = vmatpush3.bf16.msra.mxu1 %v922_v17 }
 0x10a   :  { %858 = vmatprep.subr.bf16.mxu1 %v989_v0 }
 0x10d   :  { %859 = vmatpush3.bf16.msra.mxu1 %v923_v18 }
 0x10e   :  { %860 = vmatprep.subr.bf16.mxu1 %v989_v0 }
 0x111   :  { %861 = vmatpush3.bf16.msra.mxu1 %v924_v19 }
 0x112   :  { %862 = vmatprep.subr.bf16.mxu1 %v989_v0 }
 0x115   :  { %863 = vmatpush3.bf16.msra.mxu1 %v925_v21 }
 0x1b8   :  { %v244_v40 = vpop.f32.mrf.mxu1 }
 0x1b9   :  { %v250_v41 = vrot.slane %v244_v40, 4  ;;  %v256_v42 = vmul.f32 %v244_v40, %v244_v40 }
 0x1ba   :  { %v826_v43 = vpop.f32.mrf.mxu1 }
 0x1bb   :  { %v251_v44 = vadd.f32 %v250_v41, %v244_v40  ;;  %v257_v45 = vrot.slane %v256_v42, 4 }
 0x1bc   :  { %v247_v46 = vpop.f32.mrf.mxu1 }
 0x1bd   :  { %v252_v47 = vrot.slane %v251_v44, 2  ;;  %v258_v48 = vadd.f32 %v257_v45, %v256_v42 }
 0x1be   :  { %v827_v49 = vpop.f32.mrf.mxu1 }
 0x1bf   :  { %v253_v50 = vadd.f32 %v252_v47, %v251_v44  ;;  %v259_v51 = vrot.slane %v258_v48, 2  ;;  %v421_v47 = vsub.s32 3, %v1042_v20 }
 0x1c1   :  { %v254_v52 = vrot.slane %v253_v50, 1  ;;  %v260_v53 = vadd.f32 %v259_v51, %v258_v48  ;;  %v426_v51 = vsub.s32 4, %v1042_v20 }
 0x1c3   :  { %v255_v54 = vadd.f32 %v254_v52, %v253_v50  ;;  %v261_v55 = vrot.slane %v260_v53, 1 }
 0x1c5   :  { %v262_v56 = vadd.f32 %v261_v55, %v260_v53  ;;  %v263_v57 = vmul.f32 0.125, %v255_v54 }
 0x1c7   :  { %v264_v58 = vmul.f32 0.125, %v262_v56  ;;  %v265_v59 = vmul.f32 %v263_v57, %v263_v57 }
 0x1c9   :  { %v266_v60 = vsub.f32 %v264_v58, %v265_v59  ;;  %v926_v59 = vld [vmem:[#allocation2 + $0x138] sm:$0xff]  }
 0x1cb   :  { %v267_v61 = vadd.f32 0.8, %v266_v60  ;;  %v927_v60 = vld [vmem:[#allocation2 + $0x130] sm:$0xff]  }
 0x1cd   :  { %934 = vrsqrt.f32 %v267_v61  ;;  %v928_v61 = vld [vmem:[#allocation2 + $0x128] sm:$0xff]  }
 0x1da   :  { %v935_v62 = vpop.eup %934 }
 0x1db   :  { %v269_v63 = vmul.f32 %v935_v62, %v1048_v22  ;;  %v929_v62 = vld [vmem:[#allocation2 + $0x120] sm:$0xff]  }
 0x1dd   :  { %v270_v2 = vmul.f32 %v269_v63, %v263_v57  ;;  %v278_v4 = vrot.slane %v269_v63, %v277_v1  ;;  %v930_v63 = vld [vmem:[#allocation2 + $0x118] sm:$0xff]   ;;  %v931_v1 = vld [vmem:[#allocation2 + $0x110] sm:$0xff]  }
 0x1df   :  { %v272_v3 = vrot.slane %v270_v2, 7  ;;  %v279_v7 = vmul.f32 %v278_v4, %v244_v40  ;;  %v932_v2 = vld [vmem:[#allocation2 + $0x108] sm:$0xff]  }
 0x1e1   :  { %v274_v6 = vsub.f32 %v1048_v22, %v272_v3  ;;  %v933_v3 = vld [vmem:[#allocation2 + $0x100] sm:$0xff]  }
 0x1e3   :  { %v283_v8 = vrot.slane %v274_v6, %v282_v5 }
 0x1e5   :  { %v284_v9 = vadd.f32 %v283_v8, %v279_v7 }
 0x1e7   :  { %vm285_vm2 = vcmp.gt.f32.partialorder %v284_v9, 0.0  ;;  %v286_v10 = vmul.f32 0.2, %v284_v9 }
 0x1e9   :  { %v287_v11 = vsel %vm285_vm2, %v284_v9, %v286_v10 }
 0x1ea   :  { %v288_v12 = vpack.c.bf16 %v287_v11, %v287_v11 }
 0x1ec   :  { %845 = vmatmul.mubr.bf16.vlgmr.msra.gmra.mxu0 %v288_v12 }
 0x1ed   :  { %884 = vmatprep.mubr.msk.bf16.mxu0 %vm990_vm0, %v989_v0  ;;  %869 = vmatpush3.bf16.msra.mxu0 %v926_v59 }
 0x1ee   :  { %870 = vmatprep.subr.bf16.mxu0 %v989_v0 }
 0x1f1   :  { %871 = vmatpush3.bf16.msra.mxu0 %v927_v60 }
 0x1f2   :  { %872 = vmatprep.subr.bf16.mxu0 %v989_v0 }
 0x1f5   :  { %873 = vmatpush3.bf16.msra.mxu0 %v928_v61 }
 0x1f6   :  { %874 = vmatprep.subr.bf16.mxu0 %v989_v0 }
 0x1f9   :  { %875 = vmatpush3.bf16.msra.mxu0 %v929_v62 }
 0x1fa   :  { %876 = vmatprep.subr.bf16.mxu0 %v989_v0 }
 0x1fd   :  { %877 = vmatpush3.bf16.msra.mxu0 %v930_v63 }
 0x1fe   :  { %878 = vmatprep.subr.bf16.mxu0 %v989_v0 }
 0x201   :  { %879 = vmatpush3.bf16.msra.mxu0 %v931_v1 }
 0x202   :  { %880 = vmatprep.subr.bf16.mxu0 %v989_v0 }
 0x205   :  { %881 = vmatpush3.bf16.msra.mxu0 %v932_v2 }
 0x206   :  { %882 = vmatprep.subr.bf16.mxu0 %v989_v0 }
 0x209   :  { %883 = vmatpush3.bf16.msra.mxu0 %v933_v3 }
 0x2ac   :  { %v388_v23 = vpop.f32.mrf.mxu0 }
 0x2ad   :  { %v394_v24 = vrot.slane %v388_v23, 4  ;;  %v400_v25 = vmul.f32 %v388_v23, %v388_v23 }
 0x2ae   :  { %v846_v26 = vpop.f32.mrf.mxu0 }
 0x2af   :  { %v395_v27 = vadd.f32 %v394_v24, %v388_v23  ;;  %v401_v28 = vrot.slane %v400_v25, 4 }
 0x2b0   :  { %v391_v29 = vpop.f32.mrf.mxu0 }
 0x2b1   :  { %v396_v30 = vrot.slane %v395_v27, 2  ;;  %v402_v31 = vadd.f32 %v401_v28, %v400_v25  ;;  %v565_v29 = vsub.s32 5, %v1042_v20 }
 0x2b2   :  { %v847_v32 = vpop.f32.mrf.mxu0 }
 0x2b3   :  { %v397_v33 = vadd.f32 %v396_v30, %v395_v27  ;;  %v403_v34 = vrot.slane %v402_v31, 2 }
 0x2b5   :  { %v398_v35 = vrot.slane %v397_v33, 1  ;;  %v404_v36 = vadd.f32 %v403_v34, %v402_v31 }
 0x2b7   :  { %v399_v37 = vadd.f32 %v398_v35, %v397_v33  ;;  %v405_v38 = vrot.slane %v404_v36, 1  ;;  %v570_v33 = vsub.s32 6, %v1042_v20 }
 0x2b9   :  { %v406_v39 = vadd.f32 %v405_v38, %v404_v36  ;;  %v407_v40 = vmul.f32 0.125, %v399_v37 }
 0x2bb   :  { %v408_v41 = vmul.f32 0.125, %v406_v39  ;;  %v409_v42 = vmul.f32 %v407_v40, %v407_v40 }
 0x2bd   :  { %v410_v43 = vsub.f32 %v408_v41, %v409_v42  ;;  %v596_v41 = vsub.s32 7, %v1042_v20 }
 0x2bf   :  { %v411_v44 = vadd.f32 0.8, %v410_v43  ;;  %v597_v42 = vrot.slane %v1048_v22, %v596_v41 }
 0x2c1   :  { %936 = vrsqrt.f32 %v411_v44 }
 0x2ce   :  { %v937_v45 = vpop.eup %936 }
 0x2cf   :  { %v413_v46 = vmul.f32 %v937_v45, %v1048_v22 }
 0x2d1   :  { %v414_v48 = vmul.f32 %v413_v46, %v407_v40  ;;  %v422_v50 = vrot.slane %v413_v46, %v421_v47 }
 0x2d3   :  { %v416_v49 = vrot.slane %v414_v48, 7  ;;  %v423_v53 = vmul.f32 %v422_v50, %v388_v23 }
 0x2d5   :  { %v418_v52 = vsub.f32 %v1048_v22, %v416_v49 }
 0x2d7   :  { %v427_v54 = vrot.slane %v418_v52, %v426_v51 }
 0x2d9   :  { %v428_v55 = vadd.f32 %v427_v54, %v423_v53 }
 0x2db   :  { %vm429_vm3 = vcmp.gt.f32.partialorder %v428_v55, 0.0  ;;  %v430_v56 = vmul.f32 0.2, %v428_v55 }
 0x2dd   :  { %v431_v57 = vsel %vm429_vm3, %v428_v55, %v430_v56 }
 0x2de   :  { %v432_v58 = vpack.c.bf16 %v431_v57, %v431_v57 }
 0x2e0   :  { %865 = vmatmul.mubr.bf16.vlgmr.msra.gmra.mxu1 %v432_v58 }
 0x3a0   :  { %v532_v4 = vpop.f32.mrf.mxu1 }
 0x3a1   :  { %v538_v5 = vrot.slane %v532_v4, 4  ;;  %v544_v6 = vmul.f32 %v532_v4, %v532_v4 }
 0x3a2   :  { %v866_v7 = vpop.f32.mrf.mxu1 }
 0x3a3   :  { %v539_v8 = vadd.f32 %v538_v5, %v532_v4  ;;  %v545_v9 = vrot.slane %v544_v6, 4 }
 0x3a4   :  { %v535_v10 = vpop.f32.mrf.mxu1 }
 0x3a5   :  { %v540_v11 = vrot.slane %v539_v8, 2  ;;  %v546_v12 = vadd.f32 %v545_v9, %v544_v6 }
 0x3a6   :  { %v867_v13 = vpop.f32.mrf.mxu1 }
 0x3a7   :  { %v541_v14 = vadd.f32 %v540_v11, %v539_v8  ;;  %v547_v15 = vrot.slane %v546_v12, 2 }
 0x3a9   :  { %v542_v16 = vrot.slane %v541_v14, 1  ;;  %v548_v17 = vadd.f32 %v547_v15, %v546_v12 }
 0x3ab   :  { %v543_v18 = vadd.f32 %v542_v16, %v541_v14  ;;  %v549_v19 = vrot.slane %v548_v17, 1 }
 0x3ad   :  { %v550_v21 = vadd.f32 %v549_v19, %v548_v17  ;;  %v551_v23 = vmul.f32 0.125, %v543_v18 }
 0x3af   :  { %v552_v0 = vmul.f32 0.125, %v550_v21  ;;  %v553_v24 = vmul.f32 %v551_v23, %v551_v23 }
 0x3b1   :  { %v554_v25 = vsub.f32 %v552_v0, %v553_v24 }
 0x3b3   :  { %v555_v26 = vadd.f32 0.8, %v554_v25 }
 0x3b5   :  { %938 = vrsqrt.f32 %v555_v26 }
 0x3c2   :  { %v939_v27 = vpop.eup %938 }
 0x3c3   :  { %v557_v28 = vmul.f32 %v939_v27, %v1048_v22 }
 0x3c5   :  { %v558_v30 = vmul.f32 %v557_v28, %v551_v23  ;;  %v566_v32 = vrot.slane %v557_v28, %v565_v29 }
 0x3c7   :  { %v560_v31 = vrot.slane %v558_v30, 7  ;;  %v567_v35 = vmul.f32 %v566_v32, %v532_v4 }
 0x3c9   :  { %v562_v34 = vsub.f32 %v1048_v22, %v560_v31 }
 0x3cb   :  { %v571_v36 = vrot.slane %v562_v34, %v570_v33 }
 0x3cd   :  { %v572_v37 = vadd.f32 %v571_v36, %v567_v35 }
 0x3cf   :  { %vm573_vm4 = vcmp.gt.f32.partialorder %v572_v37, 0.0  ;;  %v574_v38 = vmul.f32 0.2, %v572_v37 }
 0x3d1   :  { %v575_v39 = vsel %vm573_vm4, %v572_v37, %v574_v38 }
 0x3d2   :  { %v576_v40 = vpack.c.bf16 %v575_v39, %v575_v39 }
 0x3d4   :  { %885 = vmatmul.mubr.bf16.vlgmr.msra.gmra.mxu0 %v576_v40 }
 0x494   :  { %v680_v43 = vpop.f32.mrf.mxu0 }
 0x495   :  { %v681_v44 = vadd.f32 %v680_v43, %v597_v42 }
 0x496   :  { %v886_v45 = vpop.f32.mrf.mxu0 }
 0x497   :  { %940 = vtanh.f32 %v681_v44 }
 0x498   :  { %v683_v46 = vpop.f32.mrf.mxu0 }
 0x49a   :  { %v887_v47 = vpop.f32.mrf.mxu0 }
 0x4a4   :  { %v941_v48 = vpop.eup %940 }
 0x4a5   :  { %687 = vst [vmem:[#allocation5] sm:$0xff] %v941_v48 }
 0x4a6   :  { %973 = shalt.err (!%p970_p9)
}
 0x4a7   :  { %697 = dma.vmem_to_hbm [thread:$0]  %s695_s21, 128, %s1097_s3, [#allocation4]  }
 0x4a8   :  { %984 = dma.done.wait [#allocation4], 128  }
 0x4a9   :  { %985 = vsyncadd [#allocation4], 4294967168 }
 0x4aa   :  { %701 = vsyncpa [#allocation3], 1 }
 0x4ab   :  { %702 = vsyncpa [#allocation4], 1 }

</bundles_post_ra>
